<compile_context>
chip_gen: v7x
topology: tpu7x:2x2x1
jax: 0.10.0
libtpu: 0.0.40
codegen_flags: <defaults>
</compile_context>

<pallas_src>
import functools

import jax
import jax.numpy as jnp
import numpy as np
from jax.experimental import pallas as pl
from jax.experimental.pallas import tpu as pltpu


def positional_encoding(max_seq_len: int, d_model: int) -> jnp.ndarray:
    # Mirrors PositionalEncoder.get_encoding exactly (float32, interleaved sin/cos).
    even_i = jnp.arange(0, d_model, 2, dtype=jnp.float32)
    denominator = jnp.power(jnp.float32(10000.0), even_i / jnp.float32(d_model))
    pos = jnp.arange(max_seq_len, dtype=jnp.float32).reshape(max_seq_len, 1)
    even_pe = jnp.sin(pos / denominator)
    odd_pe = jnp.cos(pos / denominator)
    stacked = jnp.stack([even_pe, odd_pe], axis=2)        # (S, D//2, 2)
    return stacked.reshape(max_seq_len, d_model)          # (S, D)


def make_sentence_embedding_params(emb_table: jnp.ndarray, max_seq_len: int):
    """Init-time prep (hoisted out of the forward path).

    Pads d_model up to a lane-dense multiple of 128 (once, not per call) and precomputes the
    (padded) sinusoidal positional encoding.  Returns (emb_p (V, Dp) f32, pe_p (S, Dp) f32).
    """
    V, D = emb_table.shape
    Dp = ((D + 127) // 128) * 128
    pe = positional_encoding(max_seq_len, D).astype(jnp.float32)
    emb_table = emb_table.astype(jnp.float32)
    if Dp == D:
        return emb_table, pe
    emb_p = jnp.zeros((V, Dp), jnp.float32).at[:, :D].set(emb_table)
    pe_p = jnp.zeros((max_seq_len, Dp), jnp.float32).at[:, :D].set(pe)
    return emb_p, pe_p


def _choose_token_block(seq_len: int, target: int) -> int:
    """Largest chunk <= target that divides seq_len and is a multiple of 8 (sublane-dense)."""
    ts = min(target, seq_len)
    ts -= ts % 8
    while ts >= 8:
        if seq_len % ts == 0:
            return ts
        ts -= 8
    return seq_len  # small / odd S: one full-extent chunk (allowed: block dim == array dim)


def _largest_pow2_leq(n: int) -> int:
    p = 1
    while p * 2 <= n:
        p *= 2
    return p


def _gather_add_kernel(ids_ref, emb_hbm, pe_ref, out_ref, gbuf, sems, *,
                       ts, nif, seq_len, vocab_size):
    # ids_ref : (B*S,) int32, SMEM (scalar prefetch)
    # emb_hbm : (V, Dp)  f32, HBM (memory_space=pl.ANY) -- gathered row-by-row via manual DMA
    # pe_ref  : (TS, Dp) f32, VMEM -- PE rows for this chunk (re-used across the batch axis)
    # out_ref : (1, TS, Dp) f32, VMEM
    # gbuf    : (TS, Dp) f32 VMEM scratch holding the gathered embedding rows
    # sems    : (NIF,) DMA semaphores -- rolling window of in-flight row copies
    c = pl.program_id(0)          # token-chunk index (outer grid axis)
    b = pl.program_id(1)          # batch index (inner grid axis -> PE block not re-DMA'd)
    base = b * seq_len + c * ts

    def row_copy(i):
        # OOB-DMA guard (folded clamp; also keeps padded/bad ids from walking off the table).
        tok = jnp.clip(ids_ref[base + i], 0, vocab_size - 1)
        return pltpu.make_async_copy(
            emb_hbm.at[pl.ds(tok, 1), :],
            gbuf.at[pl.ds(i, 1), :],
            sems.at[i & (nif - 1)],          # nif is a power of two
        )

    # Prologue: fill the in-flight window (nif outstanding row DMAs).
    @pl.loop(0, nif)
    def _(i):
        row_copy(i).start()

    # Steady state: retire row i, immediately issue row i + nif.
    if ts > nif:
        @pl.loop(0, ts - nif)
        def _(i):
            row_copy(i).wait()
            row_copy(i + nif).start()

    # Epilogue: retire the tail.
    @pl.loop(ts - nif, ts)
    def _(i):
        row_copy(i).wait()

    # One dense, lane/sublane-aligned VPU add + unmasked store for the whole chunk.
    # Eval-mode dropout == identity.
    out_ref[0, :, :] = gbuf[...] + pe_ref[...]


def sentence_embedding(ids: jnp.ndarray, emb_padded: jnp.ndarray, pe_padded: jnp.ndarray,
                       d_model: int, *, token_block: int = 256, max_inflight: int = 8):
    """ids: (B, S) int; emb_padded: (V, Dp) f32; pe_padded: (S, Dp) f32 -> (B, S, d_model) f32."""
    B, S = ids.shape
    V, Dp = emb_padded.shape
    assert pe_padded.shape == (S, Dp)

    ts = _choose_token_block(S, token_block)
    nif = _largest_pow2_leq(max(1, min(max_inflight, ts)))
    num_chunks = S // ts

    ids_flat = ids.reshape(B * S).astype(jnp.int32)   # 1-D SMEM layout (no sublane pad)

    kernel = functools.partial(_gather_add_kernel, ts=ts, nif=nif,
                               seq_len=S, vocab_size=V)

    out_padded = pl.pallas_call(
        kernel,
        out_shape=jax.ShapeDtypeStruct((B, S, Dp), jnp.float32),
        grid_spec=pltpu.PrefetchScalarGridSpec(
            num_scalar_prefetch=1,            # ids -> SMEM
            grid=(num_chunks, B),             # batch innermost: PE chunk DMA'd once per chunk
            in_specs=[
                pl.BlockSpec(memory_space=pl.ANY),                   # table stays in HBM
                pl.BlockSpec((ts, Dp), lambda c, b, ids: (c, 0)),    # PE chunk (re-used over b)
            ],
            out_specs=pl.BlockSpec((1, ts, Dp), lambda c, b, ids: (b, c, 0)),
            scratch_shapes=[
                pltpu.VMEM((ts, Dp), jnp.float32),       # gathered-row buffer
                pltpu.SemaphoreType.DMA((nif,)),         # rolling DMA window
            ],
        ),
        compiler_params=pltpu.CompilerParams(
            dimension_semantics=("parallel", "parallel")),
    )(ids_flat, emb_padded, pe_padded)

    return out_padded if Dp == d_model else out_padded[:, :, :d_model]


if __name__ == "__main__":
    # Small config consistent with the module: max_seq_length=8, d_model=32, tiny vocab, batch=2.
    max_seq_length = 8
    d_model = 32
    batch = 2

    PADDING_TOKEN = "<PAD>"
    vocab = [PADDING_TOKEN, "<SOS>", "<EOS>", "a", "b", "c", "d", "e", "f", "g", "h", "i"]
    vocab_to_index = {tok: i for i, tok in enumerate(vocab)}
    vocab_size = len(vocab_to_index)
    pad_idx = vocab_to_index[PADDING_TOKEN]

    key = jax.random.PRNGKey(0)
    k_emb, k_ids = jax.random.split(key)

    # nn.Embedding init ~ N(0,1), with padding_idx row zeroed.
    emb_table = jax.random.normal(k_emb, (vocab_size, d_model), dtype=jnp.float32)
    emb_table = emb_table.at[pad_idx].set(0.0)

    # Init-time prep (padding + PE) — hoisted out of the forward path.
    emb_p, pe_p = make_sentence_embedding_params(emb_table, max_seq_length)

    # Deterministic token ids (include some padding tokens).
    ids = jax.random.randint(k_ids, (batch, max_seq_length), 0, vocab_size, dtype=jnp.int32)
    ids = ids.at[:, -1].set(pad_idx)

    out = sentence_embedding(ids, emb_p, pe_p, d_model)
    out = jax.block_until_ready(out)

    # Reference check (plain JAX gather + add; eval-mode dropout == identity).
    pe = positional_encoding(max_seq_length, d_model)
    ref = jnp.take(emb_table, ids, axis=0) + pe[None, :, :]
    assert out.shape == (batch, max_seq_length, d_model)
    assert np.allclose(np.asarray(out), np.asarray(ref), atol=1e-5, rtol=1e-5)

    print("KERNEL_OK")
</pallas_src>

<mosaic_0001>
module attributes {stable_mosaic.version = 11 : i64} {
  func.func @_gather_add_kernel(%arg0: i32, %arg1: i32, %arg2: memref<16xi32, #tpu.memory_space<smem>>, %arg3: memref<12x128xf32, #tpu.memory_space<any>>, %arg4: memref<8x128xf32, #tpu.memory_space<vmem>>, %arg5: memref<1x8x128xf32, #tpu.memory_space<vmem>>, %arg6: memref<8x128xf32, #tpu.memory_space<vmem>>, %arg7: memref<8x!tpu.dma_semaphore, #tpu.memory_space<semaphore_mem>>) attributes {dimension_semantics = [#tpu.dimension_semantics<parallel>, #tpu.dimension_semantics<parallel>], iteration_bounds = array<i64: 1, 2>, scalar_prefetch = 1 : i64, scratch_operands = 2 : i64, tpu.core_type = #tpu.core_type<tc>, window_params = [{}, {transform_indices = @transform_1, window_bounds = array<i64: 8, 128>}, {transform_indices = @transform_2, window_bounds = array<i64: 1, 8, 128>}]} {
    %c8_i32 = arith.constant 8 : i32
    %0 = arith.muli %arg1, %c8_i32 : i32
    %c8_i32_0 = arith.constant 8 : i32
    %1 = arith.muli %arg0, %c8_i32_0 : i32
    %2 = arith.addi %0, %1 : i32
    %c0_i32 = arith.constant 0 : i32
    %c8_i32_1 = arith.constant 8 : i32
    %3 = arith.addi %c0_i32, %c8_i32_1 : i32
    %c1_i32 = arith.constant 1 : i32
    scf.for %arg8 = %c0_i32 to %3 step %c1_i32  : i32 {
      %c1_i32_13 = arith.constant 1 : i32
      %11 = arith.muli %arg8, %c1_i32_13 : i32
      %c0_i32_14 = arith.constant 0 : i32
      %12 = arith.addi %c0_i32_14, %11 : i32
      %13 = arith.addi %2, %12 : i32
      %14 = arith.index_cast %13 : i32 to index
      %15 = memref.load %arg2[%14] : memref<16xi32, #tpu.memory_space<smem>>
      %c0_i32_15 = arith.constant 0 : i32
      %c11_i32 = arith.constant 11 : i32
      %16 = arith.maxsi %c0_i32_15, %15 : i32
      %17 = arith.minsi %c11_i32, %16 : i32
      %c7_i32 = arith.constant 7 : i32
      %18 = arith.andi %12, %c7_i32 : i32
      %c0_i32_16 = arith.constant 0 : i32
      %19 = tpu.memref_slice %arg3[%17, %c0_i32_16] : memref<12x128xf32, #tpu.memory_space<any>> -> memref<1x128xf32, #tpu.memory_space<any>>
      %c0_i32_17 = arith.constant 0 : i32
      %20 = tpu.memref_slice %arg6[%12, %c0_i32_17] : memref<8x128xf32, #tpu.memory_space<vmem>> -> memref<1x128xf32, #tpu.memory_space<vmem>>
      %21 = tpu.memref_slice %arg7[%18] : memref<8x!tpu.dma_semaphore, #tpu.memory_space<semaphore_mem>> -> memref<1x!tpu.dma_semaphore, #tpu.memory_space<semaphore_mem>>
      %22 = tpu.memref_squeeze %21 : memref<1x!tpu.dma_semaphore, #tpu.memory_space<semaphore_mem>> -> memref<!tpu.dma_semaphore, #tpu.memory_space<semaphore_mem>>
      tpu.enqueue_dma source(%19 : memref<1x128xf32, #tpu.memory_space<any>>) target(%20 : memref<1x128xf32, #tpu.memory_space<vmem>>) target_semaphore(%22 : memref<!tpu.dma_semaphore, #tpu.memory_space<semaphore_mem>>)
    }
    %c8_i32_2 = arith.constant 8 : i32
    %c0_i32_3 = arith.constant 0 : i32
    %c8_i32_4 = arith.constant 8 : i32
    %4 = arith.addi %c0_i32_3, %c8_i32_4 : i32
    %c1_i32_5 = arith.constant 1 : i32
    scf.for %arg8 = %c0_i32_3 to %4 step %c1_i32_5  : i32 {
      %c1_i32_13 = arith.constant 1 : i32
      %11 = arith.muli %arg8, %c1_i32_13 : i32
      %c0_i32_14 = arith.constant 0 : i32
      %12 = arith.addi %c0_i32_14, %11 : i32
      %13 = arith.addi %2, %12 : i32
      %14 = arith.index_cast %13 : i32 to index
      %15 = memref.load %arg2[%14] : memref<16xi32, #tpu.memory_space<smem>>
      %c0_i32_15 = arith.constant 0 : i32
      %c11_i32 = arith.constant 11 : i32
      %16 = arith.maxsi %c0_i32_15, %15 : i32
      %17 = arith.minsi %c11_i32, %16 : i32
      %c7_i32 = arith.constant 7 : i32
      %18 = arith.andi %12, %c7_i32 : i32
      %c0_i32_16 = arith.constant 0 : i32
      %19 = tpu.memref_slice %arg3[%17, %c0_i32_16] : memref<12x128xf32, #tpu.memory_space<any>> -> memref<1x128xf32, #tpu.memory_space<any>>
      %c0_i32_17 = arith.constant 0 : i32
      %20 = tpu.memref_slice %arg6[%12, %c0_i32_17] : memref<8x128xf32, #tpu.memory_space<vmem>> -> memref<1x128xf32, #tpu.memory_space<vmem>>
      %21 = tpu.memref_slice %arg7[%18] : memref<8x!tpu.dma_semaphore, #tpu.memory_space<semaphore_mem>> -> memref<1x!tpu.dma_semaphore, #tpu.memory_space<semaphore_mem>>
      %22 = tpu.memref_squeeze %21 : memref<1x!tpu.dma_semaphore, #tpu.memory_space<semaphore_mem>> -> memref<!tpu.dma_semaphore, #tpu.memory_space<semaphore_mem>>
      tpu.wait_dma2 semaphore(%22 : memref<!tpu.dma_semaphore, #tpu.memory_space<semaphore_mem>>) src(%19 : memref<1x128xf32, #tpu.memory_space<any>>) dst(%20 : memref<1x128xf32, #tpu.memory_space<vmem>>)
    }
    %c8_i32_6 = arith.constant 8 : i32
    %c0 = arith.constant 0 : index
    %c0_7 = arith.constant 0 : index
    %5 = vector.load %arg6[%c0, %c0_7] : memref<8x128xf32, #tpu.memory_space<vmem>>, vector<8x128xf32>
    %c0_8 = arith.constant 0 : index
    %c0_9 = arith.constant 0 : index
    %6 = vector.load %arg4[%c0_8, %c0_9] : memref<8x128xf32, #tpu.memory_space<vmem>>, vector<8x128xf32>
    %7 = arith.addf %5, %6 : vector<8x128xf32>
    %c0_10 = arith.constant 0 : index
    %c0_11 = arith.constant 0 : index
    %c0_12 = arith.constant 0 : index
    %8 = vector.load %arg5[%c0_10, %c0_11, %c0_12] : memref<1x8x128xf32, #tpu.memory_space<vmem>>, vector<1x8x128xf32>
    %9 = vector.shape_cast %8 : vector<1x8x128xf32> to vector<8x128xf32>
    %10 = vector.shape_cast %7 : vector<8x128xf32> to vector<1x8x128xf32>
    tpu.vector_store %arg5[%c0_10, %c0_11, %c0_12], %10 {strides = array<i32>} : memref<1x8x128xf32, #tpu.memory_space<vmem>>, vector<1x8x128xf32>,
    return
  }
  func.func @transform_1(%arg0: i32, %arg1: i32, %arg2: memref<16xi32, #tpu.memory_space<smem>>) -> (i32, i32) {
    %c0_i32 = arith.constant 0 : i32
    %c0_i32_0 = arith.constant 0 : i32
    return %arg0, %c0_i32 : i32, i32
  }
  func.func @transform_2(%arg0: i32, %arg1: i32, %arg2: memref<16xi32, #tpu.memory_space<smem>>) -> (i32, i32, i32) {
    %c0_i32 = arith.constant 0 : i32
    %c0_i32_0 = arith.constant 0 : i32
    return %arg1, %arg0, %c0_i32 : i32, i32, i32
  }
}

</mosaic_0001>

<bundles_post_ra>
// kernel: tpu_custom_call.1
= control target key start
LH: loop header
LB: loop body
LE: loop exit
PB: predicated region body
PF: predicated region fallthrough
CT: control target
= control target key end

     0   :  { %s830_s0 = inlined_call_operand.hbm [shape: s32[16], index: 0, kind: input, shape index: {}]   ;;  %s831_s1 = inlined_call_operand.hbm [shape: f32[12,128], index: 1, kind: input, shape index: {}]   ;;  %s832_s2 = inlined_call_operand.hbm [shape: f32[8,128], index: 2, kind: input, shape index: {}]   ;;  %s833_s3 = inlined_call_operand.hbm [shape: f32[2,8,128], index: 3, kind: output, shape index: {}]  }
   0x1   :  { %s449_s14 = scalar_lea.hbm %s830_s0, 16 }
   0x2   :  { %p450_p0 = scmp.ne.s32.totalorder %s830_s0, %s449_s14  ;;  %p453_p1 = scmp.lt.u32.totalorder %s449_s14, %s830_s0 }
   0x4   :  { %p455_p2 = pnand %p453_p1, %p450_p0 }
   0x6   :  { %458 = shalt.err (!%p455_p2)  }
   0x7   :  { %s615_s19 = smov [#allocation5]  }
   0x8   :  { %9 = dma.hbm_to_smem %s830_s0, 16, %s615_s19, [#allocation4] }
   0x9   :  { %571 = dma.done.wait [#allocation4], 16 }
   0xa   :  { %572 = vsyncadd [#allocation4], 4294967280 }
   0xb   :  { %11 = sfence }
   0xc   :  { %12 = vsyncpa [#allocation7], 0 }
   0xd   :  { %13 = vsyncpa [#allocation8], 0 }
   0xe   :  { %15 = vsyncpa [#allocation8 + $0x1], 0  ;;  %s651_s22 = smov 0   ;;  %s653_s23 = smov 0  }
   0xf   :  { %s655_s24 = smov 0   ;;  %s657_s25 = smov 0  }
  0x10   :  { %s659_s26 = smov 0   ;;  %s661_s27 = smov 0  }
  0x11 LB: > { %s338_s0 = sadd.s32 4294967295, %s605_s27   ;;  %s339_s28 = sadd.s32 4294967294, %s605_s27   ;;  %s605_s27 = sphi %s661_s27, %s21_s27   ;;  %s601_s26 = sphi %s659_s26, %s854_s26   ;;  %s597_s25 = sphi %s657_s25, %s853_s25   ;;  %s593_s24 = sphi %s655_s24, %s852_s24   ;;  %s589_s23 = sphi %s653_s23, %s851_s23   ;;  %s585_s22 = sphi %s651_s22, %s850_s22  }
  0x12   : > { %s30_s29 = sadd.s32 1, %s601_s26  ;;  %s68_s30 = sadd.s32 1, %s593_s24 }
  0x13   : > { %p31_p3 = scmp.ge.s32.totalorder %s30_s29, 2  ;;  %p78_p4 = scmp.ne.s32.totalorder %s593_s24, %s589_s23 }
  0x14   : > { %p79_p5 = scmp.eq.s32.totalorder %s338_s0, 1  ;;  %p84_p6 = scmp.ne.s32.totalorder %s589_s23, %s585_s22 }
  0x15   : > { %s856_s29 = smov (%p31_p3, %s30_s29), 0  ;;  %p85_p8 = scmp.eq.s32.totalorder %s339_s28, 1 }
  0x16   : > { %p691_p7 = por %p79_p5, %p78_p4  ;;  %s63_s5 = ssub.s32 %s601_s26, %s856_s29 }
  0x17   : > { %p340_p9 = scmp.ge.s32.totalorder %s605_s27, 1  ;;  %p66_p10 = scmp.eq.s32.totalorder %s63_s5, 0 }
  0x18   : > { %s839_s4 = scalar_select %p691_p7, 1, 0 }
  0x19   : > { %p698_p11 = por %p85_p8, %p84_p6  ;;  %p92_p12 = scmp.lt.s32.totalorder %s605_s27, 3 }
  0x1a   : > { %s704_s7 = scalar_select %p66_p10, %s593_s24, %s68_s30  }
  0x1b   : > { %s840_s6 = scalar_select %p698_p11, 1, 0 }
  0x1c   : > { %p706_p13 = pnand %p340_p9, %p92_p12  ;;  %p710_p0 = scmp.eq.s32.totalorder %s338_s0, 0 }
  0x1d   : > { %s616_s10 = smov [#allocation6]   ;;  %s459_s15 = scalar_lea.hbm %s832_s2, 128 }
  0x1e   : > { %s841_s8 = scalar_select %p706_p13, 1, 0 }
  0x1f   : > { %s842_s9 = scalar_select %p710_p0, 1, 0 }
  0x20   : > { %p372_p1 = pneg %p706_p13  ;;  %s107_s11 = sshll.u32 %s616_s10, 4  ;;  %s108_s11 = int_to_ptr.vmem [resolvable:$true] %s107_s11 }
  0x21   : > { %p460_p3 = scmp.ne.s32.totalorder %s832_s2, %s459_s15  ;;  %p466_p8 = scmp.lt.u32.totalorder %s459_s15, %s832_s2 }
  0x22   : > { %p718_p2 = pnand %p710_p0, %p372_p1 }
  0x24   : > { %p461_p4 = pneg %p718_p2 }
  0x26   : > { %p462_p5 = pnand %p461_p4, %p460_p3 }
  0x28   : > { %p463_p6 = pneg %p462_p5 }
  0x2a   : > { %p468_p9 = pnand %p466_p8, %p463_p6 }
  0x2c   : > { %471 = shalt.err (!%p468_p9)
}
  0x2d   : > { %s472_s20 = scalar_lea.vmem %s108_s11, 128  ;;  %p480_p11 = scmp.lt.s32.totalorder %s108_s11, %s108_s11 }
  0x2e   : > { %p473_p10 = scmp.ne.s32.totalorder %s108_s11, %s472_s20  ;;  %p481_p7 = scmp.lt.s32.totalorder %s472_s20, %s472_s20 }
  0x30   : > { %p475_p12 = pnand %p473_p10, %p461_p4  ;;  %p482_p0 = por %p481_p7, %p480_p11 }
  0x32   : > { %p476_p1 = pneg %p475_p12 }
  0x34   : > { %p483_p13 = pnand %p482_p0, %p476_p1 }
  0x36   : > { %486 = shalt.err (!%p483_p13)
}
  0x37   : > { %375 = dma.hbm_to_vmem [thread:$0]  (!%p718_p2), %s832_s2, 128, %s108_s11, [#allocation7]  }
  0x38   : > { %p844_p3 = scmp.ne.s32.totalorder %s841_s8, 0 }
  0x39   : > { %p845_p5 = scmp.ne.s32.totalorder (!%p844_p3), %s842_s9, 0 }
  0x3a   : > { %120 = sbr.rel (%p844_p3) target bundleno = 145 (0x91), region = 24 }
  0x41   : > { %574 = dma.done.wait (%p845_p5), [#allocation7], 128  }
  0x42   : > { %576 = vsyncadd (%p845_p5), [#allocation7], 4294967168  ;;  %s838_s28 = sand.u32 1, %s589_s23   ;;  %s751_s11 = smov 0  }
  0x43   : > { %s748_s5 = sshll.u32 %s838_s28, 3 }
  0x44   : > { %s134_s10 = scalar_lea.vmem [#allocation9], %s748_s5 }
  0x45 LB: >> { %s846_s30 = sshll.u32 %s597_s25, 3  ;;  %s150_s12 = sand.u32 7, %s609_s11  ;;  %s609_s11 = sphi %s751_s11, %s143_s11  }
  0x46   : >> { %s144_s8 = sadd.s32 %s609_s11, %s846_s30  ;;  %s153_s13 = scalar_lea.vmem [#allocation2], %s609_s11 }
  0x47   : >> { %s145_s9 = sld [smem:[#allocation5 + %s144_s8]]  ;;  %s162_s14 = sshll.u32 %s153_s13, 4  ;;  %s163_s14 = int_to_ptr.vmem [resolvable:$true] %s162_s14 }
  0x48   : >> { %s154_s19 = scalar_lea.sflag [#allocation3], %s150_s12  ;;  %s489_s8 = scalar_lea.hbm %s831_s1, 256 }
  0x4d   : >> { %p146_p7 = scmp.gt.s32.totalorder %s145_s9, 0  ;;  %p346_p11 = scmp.lt.s32.totalorder %s145_s9, 11 }
  0x4f   : >> { %s858_s9 = smov (!%p146_p7, %s145_s9), 0 }
  0x50   : >> { %s860_s9 = smov (!%p346_p11, %s858_s9), 11 }
  0x51   : >> { %s351_s15 = sshll.u32 %s860_s9, 4 }
  0x52   : >> { %s152_s18 = scalar_lea.hbm %s831_s1, %s351_s15 }
  0x53   : >> { %s487_s20 = scalar_lea.hbm %s152_s18, 16  ;;  %p490_p0 = scmp.lt.u32.totalorder %s152_s18, %s831_s1 }
  0x54   : >> { %p488_p13 = scmp.ne.s32.totalorder %s152_s18, %s487_s20  ;;  %p491_p2 = scmp.lt.u32.totalorder %s489_s8, %s487_s20 }
  0x55   : >> { %p493_p6 = scmp.lt.u32.totalorder %s487_s20, %s152_s18 }
  0x56   : >> { %p492_p4 = por %p491_p2, %p490_p0 }
  0x58   : >> { %p494_p8 = por %p493_p6, %p492_p4 }
  0x5a   : >> { %p495_p9 = pnand %p494_p8, %p488_p13 }
  0x5c   : >> { %498 = shalt.err (!%p495_p9)  }
  0x5d   : >> { %s499_s9 = scalar_lea.vmem %s163_s14, 16  ;;  %s617_s13 = smov [#allocation2]  }
  0x5e   : >> { %p500_p10 = scmp.ne.s32.totalorder %s163_s14, %s499_s9  ;;  %s501_s12 = sshll.u32 %s617_s13, 4  ;;  %s502_s12 = int_to_ptr.vmem [resolvable:$false] %s501_s12 }
  0x5f   : >> { %s503_s15 = scalar_lea.vmem %s502_s12, 128  ;;  %p504_p12 = scmp.lt.s32.totalorder %s163_s14, %s502_s12 }
  0x60   : >> { %p505_p1 = scmp.lt.s32.totalorder %s503_s15, %s499_s9 }
  0x62   : >> { %p506_p3 = por %p505_p1, %p504_p12 }
  0x64   : >> { %p507_p5 = pnand %p506_p3, %p500_p10 }
  0x66   : >> { %510 = shalt.err (!%p507_p5)  }
  0x67   : >> { %165 = dma.hbm_to_vmem [thread:$0]  %s152_s18, 16, %s163_s14, %s154_s19 }
  0x68   : >> { %s143_s11 = sadd.s32 1, %s609_s11  }
  0x69   : >> { %p140_p7 = scmp.ge.s32.totalorder %s143_s11, 8  }
  0x6a   : > { %s611_s28 = smov (%p140_p7), 0  }
  0x6b   : > { %142 = sbr.rel (!%p140_p7) target bundleno = 69 (0x45), region = 91 }
  0x72 LB: >> { %s174_s30 = sand.u32 7, %s613_s28  ;;  %s613_s28 = sphi %s611_s28, %s171_s28  }
  0x73   : >> { %s175_s16 = scalar_lea.sflag [#allocation3], %s174_s30 }
  0x74   : >> { %577 = dma.done.wait %s175_s16, 16 }
  0x75   : >> { %578 = vsyncadd %s175_s16, 4294967280  ;;  %s171_s28 = sadd.s32 1, %s613_s28  }
  0x76   : >> { %p168_p11 = scmp.ge.s32.totalorder %s171_s28, 8  }
  0x77   : > { %v179_v0 = vld [vmem:[#allocation2] sm:$0xff] (%p168_p11)  ;;  %v180_v1 = vld [vmem:[#allocation6] sm:$0xff] (%p168_p11)  ;;  %s353_s11 = sshll.u32 (%p168_p11), %s597_s25, 7  ;;  %s198_s19 = sshll.u32 (%p168_p11), %s134_s10, 4  ;;  %s781_s19 = int_to_ptr.vmem [resolvable:$true] %s198_s19 }
  0x78   : > { %170 = sbr.rel (!%p168_p11) target bundleno = 114 (0x72), region = 102  ;;  %v181_v2 = vadd.f32 (%p168_p11), %v180_v1, %v179_v0  ;;  %s777_s18 = scalar_lea.hbm (%p168_p11), %s833_s3, %s353_s11 }
  0x79   : > { %s847_s20 = sand.u32 (%p168_p11), 1, %s589_s23   ;;  %s511_s0 = scalar_lea.vmem (%p168_p11), %s781_s19, 128 }
  0x7a   : > { %182 = vst [vmem:[%s134_s10] sm:$0xff] (%p168_p11), %v181_v2  ;;  %s184_s21 = scalar_lea.sflag (%p168_p11), [#allocation8], %s847_s20  ;;  %p512_p13 = scmp.ne.s32.totalorder (%p168_p11), %s781_s19, %s511_s0 }
  0x7b   : > { %p848_p0 = scmp.ne.s32.totalorder (%p168_p11), %s839_s4, 0  ;;  %s618_s25 = smov (%p168_p11), [#allocation9]  }
  0x7c   : > { %s515_s8 = sshll.u32 (%p168_p11), %s618_s25, 4  ;;  %s516_s8 = int_to_ptr.vmem [resolvable:$false] %s515_s8 }
  0x7d   : > { %p513_p2 = pnand (%p168_p11), %p512_p13, %p848_p0  ;;  %s517_s9 = scalar_lea.vmem (%p168_p11), %s516_s8, 256 }
  0x7e   : > { %p518_p6 = scmp.lt.s32.totalorder (%p168_p11), %s781_s19, %s516_s8  ;;  %p519_p8 = scmp.lt.s32.totalorder (%p168_p11), %s517_s9, %s511_s0 }
  0x7f   : > { %p514_p4 = pneg %p513_p2 }
  0x80   : > { %p520_p9 = por %p519_p8, %p518_p6 }
  0x82   : > { %p521_p10 = pnand %p520_p9, %p514_p4 }
  0x84   : > { %524 = shalt.err (!%p521_p10)
}
  0x85   : > { %s525_s5 = scalar_lea.hbm %s777_s18, 128  ;;  %s529_s12 = scalar_lea.hbm %s833_s3, 256 }
  0x86   : > { %p526_p12 = scmp.ne.s32.totalorder %s777_s18, %s525_s5  ;;  %p530_p5 = scmp.lt.u32.totalorder %s777_s18, %s833_s3 }
  0x87   : > { %p531_p7 = scmp.lt.u32.totalorder %s529_s12, %s525_s5  ;;  %p533_p13 = scmp.lt.u32.totalorder %s525_s5, %s777_s18 }
  0x88   : > { %p527_p1 = pnand %p526_p12, %p848_p0 }
  0x89   : > { %p532_p11 = por %p531_p7, %p530_p5 }
  0x8a   : > { %p528_p3 = pneg %p527_p1 }
  0x8b   : > { %p534_p2 = por %p533_p13, %p532_p11 }
  0x8d   : > { %p535_p4 = pnand %p534_p2, %p528_p3 }
  0x8f   : > { %538 = shalt.err (!%p535_p4)
}
  0x90   : > { %370 = dma.vmem_to_hbm [thread:$0]  (%p848_p0), %s781_s19, 128, %s777_s18, %s184_s21  }
  0x91 PF: > { %p382_p6 = scmp.ge.s32.totalorder %s605_s27, 2  ;;  %s210_s30 = sand.u32 1, %s585_s22  }
  0x92   : > { %p849_p8 = scmp.ne.s32.totalorder %s840_s6, 0  ;;  %s211_s16 = scalar_lea.sflag [#allocation8], %s210_s30 }
  0x94   : > { %p377_p9 = pnand %p382_p6, %p849_p8 }
  0x96   : > { %580 = dma.done.wait (!%p377_p9), %s211_s16, 128  }
  0x97   : > { %582 = vsyncadd (!%p377_p9), %s211_s16, 4294967168  ;;  %s21_s27 = sadd.s32 1, %s605_s27   ;;  %s850_s22 = smov %s589_s23 }
  0x98   : > { %p18_p10 = scmp.ge.s32.totalorder %s21_s27, 4   ;;  %s851_s23 = smov %s593_s24 }
  0x99   : > { %s852_s24 = smov %s704_s7  ;;  %s853_s25 = smov %s601_s26 }
  0x9a   : > { %s854_s26 = smov %s856_s29  ;;  %20 = sbr.rel (!%p18_p10) target bundleno = 17 (0x11), region = 113 }
  0xa1   :  { %216 = vsyncpa [#allocation7], 1 }
  0xa2   :  { %218 = vsyncpa [#allocation7 + $0x1], 1 }
  0xa3   :  { %219 = vsyncpa [#allocation8], 1 }
  0xa4   :  { %221 = vsyncpa [#allocation8 + $0x1], 1 }
  0xa5   :  { %222 = vsyncmov [#allocation3] }
  0xa8   :  { %s223_s4 = vpop.sfrf %222 }
  0xa9   :  { %p356_p0 = scmp.ne.s32.totalorder %s223_s4, 0 }
  0xab   :  { %227 = shalt.err (%p356_p0)  }
  0xac   :  { %229 = vsyncmov [#allocation3 + $0x1] }
  0xaf   :  { %s230_s6 = vpop.sfrf %229 }
  0xb0   :  { %p357_p12 = scmp.ne.s32.totalorder %s230_s6, 0 }
  0xb2   :  { %234 = shalt.err (%p357_p12)  }
  0xb3   :  { %236 = vsyncmov [#allocation3 + $0x2] }
  0xb6   :  { %s237_s7 = vpop.sfrf %236 }
  0xb7   :  { %p358_p1 = scmp.ne.s32.totalorder %s237_s7, 0 }
  0xb9   :  { %241 = shalt.err (%p358_p1)  }
  0xba   :  { %243 = vsyncmov [#allocation3 + $0x3] }
  0xbd   :  { %s244_s29 = vpop.sfrf %243 }
  0xbe   :  { %p359_p3 = scmp.ne.s32.totalorder %s244_s29, 0 }
  0xc0   :  { %248 = shalt.err (%p359_p3)  }
  0xc1   :  { %250 = vsyncmov [#allocation3 + $0x4] }
  0xc4   :  { %s251_s1 = vpop.sfrf %250 }
  0xc5   :  { %p360_p5 = scmp.ne.s32.totalorder %s251_s1, 0 }
  0xc7   :  { %255 = shalt.err (%p360_p5)  }
  0xc8   :  { %257 = vsyncmov [#allocation3 + $0x5] }
  0xcb   :  { %s258_s2 = vpop.sfrf %257 }
  0xcc   :  { %p361_p7 = scmp.ne.s32.totalorder %s258_s2, 0 }
  0xce   :  { %262 = shalt.err (%p361_p7)  }
  0xcf   :  { %264 = vsyncmov [#allocation3 + $0x6] }
  0xd2   :  { %s265_s3 = vpop.sfrf %264 }
  0xd3   :  { %p362_p11 = scmp.ne.s32.totalorder %s265_s3, 0 }
  0xd5   :  { %269 = shalt.err (%p362_p11)  }
  0xd6   :  { %271 = vsyncmov [#allocation3 + $0x7] }
  0xd9   :  { %s272_s22 = vpop.sfrf %271 }
  0xda   :  { %p363_p13 = scmp.ne.s32.totalorder %s272_s22, 0 }
  0xdc   :  { %276 = shalt.err (%p363_p13)  }

</bundles_post_ra>
